<compile_context>
chip_gen: v7x
topology: tpu7x:2x2x1
jax: 0.10.0
libtpu: 0.0.40
codegen_flags: <defaults>
</compile_context>

<pallas_src>
import functools

import jax
import jax.numpy as jnp
from jax.experimental import pallas as pl
from jax.experimental.pallas import tpu as pltpu

PADDING_IDX = 1  # ESM-1b alphabet.padding_idx (mask is dead code in the reference)

_TARGET_TILE_BYTES = 8 << 20   # ~8 MiB per input tile -> 16 MiB double-buffered
_VMEM_LIMIT_BYTES = 48 << 20   # comfortably under v7x's 64 MiB physical VMEM


def _pick_row_tile(n_rows, row_bytes, target_bytes=_TARGET_TILE_BYTES):
    """Largest divisor of n_rows that is a multiple of 8 (or n_rows itself, to
    satisfy the (8,128) block constraint) whose tile fits in ~target_bytes.
    Falls back to the smallest legal divisor if nothing fits."""
    max_rows = max(1, target_bytes // max(1, row_bytes))
    cands = set()
    d = 1
    while d * d <= n_rows:
        if n_rows % d == 0:
            for c in (d, n_rows // d):
                if c % 8 == 0 or c == n_rows:
                    cands.add(c)
        d += 1
    cands = sorted(cands)
    fitting = [c for c in cands if c <= max_rows]
    return fitting[-1] if fitting else cands[0]


# ---------------------------------------------------------------------------
# Kernels
# ---------------------------------------------------------------------------
def _avg_sum_kernel(x_ref, o_ref, acc_ref, *, inv_count):
    # grid = (Bp, Rp // TR); x_ref: (TR, D) row tile; o_ref: (1, 1, D)
    # acc_ref: (SUB, D) f32 per-sublane partial accumulator, resident across the
    # (arbitrary) reduction axis.
    # inv_count: None -> emit raw f32 sum (combined/scaled in XLA epilogue);
    #            float -> scale + cast to o_ref dtype inside the kernel.
    j = pl.program_id(1)

    @pl.when(j == 0)
    def _():
        acc_ref[...] = jnp.zeros_like(acc_ref)

    x = x_ref[...].astype(jnp.float32)            # (TR, D)
    sub = acc_ref.shape[0]
    if sub > 1:
        # Regroup rows as (TR//SUB, SUB, D): the reduction over the major axis is
        # plain elementwise VALU vreg adds -- no per-step cross-sublane (XLU) work.
        acc_ref[...] += jnp.sum(x.reshape(-1, sub, x.shape[-1]), axis=0)
    else:
        acc_ref[...] += jnp.sum(x, axis=0, keepdims=True)

    @pl.when(j == pl.num_programs(1) - 1)
    def _():
        # Single cross-sublane (XLU) reduce, once per output row.
        total = jnp.sum(acc_ref[...], axis=0, keepdims=True)
        if inv_count is not None:
            total = total * inv_count
        o_ref[0] = total.astype(o_ref.dtype)


def _cls_kernel(x_ref, o_ref):
    # grid = (B,); x_ref: (1, s2_blk, D) -- only an 8-row slice of outputs[b, 0]
    # is DMA'd; o_ref: (1, 1, D)
    o_ref[...] = x_ref[:, 0:1, :]


# ---------------------------------------------------------------------------
# Wrapper (Pooler.forward equivalent)
# ---------------------------------------------------------------------------
def pooler_forward(pooler_type, tokens, outputs):
    assert pooler_type in ("cls", "avg"), "unrecognized pooling type %s" % pooler_type
    del tokens  # attention_mask in the reference forward is dead code (never used)
    B, S1, S2, D = outputs.shape

    if pooler_type == "cls":
        # Only need row 0 of the (S2, D) slab; read the minimum legal 8-row slice.
        s2_blk = S2 if S2 < 8 else 8
        out = pl.pallas_call(
            _cls_kernel,
            out_shape=jax.ShapeDtypeStruct((B, 1, D), outputs.dtype),
            grid_spec=pltpu.PrefetchScalarGridSpec(
                num_scalar_prefetch=0,
                grid=(B,),
                in_specs=[
                    pl.BlockSpec(
                        (pl.Squeezed(), 1, s2_blk, D),
                        lambda b: (b, 0, 0, 0),
                    )
                ],
                out_specs=pl.BlockSpec((1, 1, D), lambda b: (b, 0, 0)),
            ),
            compiler_params=pltpu.CompilerParams(
                dimension_semantics=("parallel",)
            ),
        )(outputs)
        return out[:, 0, :]

    # pooler_type == "avg":  mean over dims 1,2 == sum over S1*S2 rows / (S1*S2)
    R = S1 * S2
    x = outputs.reshape(B, R, D)  # free: contiguous reshape

    # If B == 1, split rows into a parallel pseudo-batch so both TensorCores
    # stream HBM; the tiny cross-split combine is finished in XLA below.
    nsplit = 1
    if B == 1:
        for cand in (8, 4, 2):
            if R % cand == 0 and (R // cand) >= 8:
                nsplit = cand
                break
        x = x.reshape(B * nsplit, R // nsplit, D)

    Bp, Rp, _ = x.shape
    tr = _pick_row_tile(Rp, D * x.dtype.itemsize)   # divisor of Rp, multiple of 8 (or Rp)
    sub = 8 if tr % 8 == 0 else 1

    # If there is no pseudo-batch split, finalize (scale + cast) inside the
    # kernel so no extra XLA pass over the result is needed.
    finalize_in_kernel = nsplit == 1
    out_dtype = outputs.dtype if finalize_in_kernel else jnp.float32
    inv_count = (1.0 / R) if finalize_in_kernel else None

    partial = pl.pallas_call(
        functools.partial(_avg_sum_kernel, inv_count=inv_count),
        out_shape=jax.ShapeDtypeStruct((Bp, 1, D), out_dtype),
        grid_spec=pltpu.PrefetchScalarGridSpec(
            num_scalar_prefetch=0,
            grid=(Bp, Rp // tr),
            in_specs=[
                pl.BlockSpec((pl.Squeezed(), tr, D), lambda b, j: (b, j, 0))
            ],
            out_specs=pl.BlockSpec((1, 1, D), lambda b, j: (b, 0, 0)),
            scratch_shapes=[pltpu.VMEM((sub, D), jnp.float32)],
        ),
        compiler_params=pltpu.CompilerParams(
            dimension_semantics=("parallel", "arbitrary"),
            vmem_limit_bytes=_VMEM_LIMIT_BYTES,
        ),
    )(x)

    if finalize_in_kernel:
        return partial[:, 0, :]

    # Tiny epilogue in XLA: combine pseudo-batch partial sums, scale, cast.
    sums = partial.reshape(B, nsplit, D).sum(axis=1)
    return (sums * (1.0 / R)).astype(outputs.dtype)


# ---------------------------------------------------------------------------
# Demo / correctness check
# ---------------------------------------------------------------------------
if __name__ == "__main__":
    key = jax.random.PRNGKey(0)
    k_tok, k_out = jax.random.split(key)

    B, S1, S2, D = 2, 8, 8, 32
    tokens = jax.random.randint(k_tok, (B, S1), minval=0, maxval=33, dtype=jnp.int32)
    outputs = jax.random.normal(k_out, (B, S1, S2, D), dtype=jnp.float32)

    cls_fn = jax.jit(functools.partial(pooler_forward, "cls"))
    avg_fn = jax.jit(functools.partial(pooler_forward, "avg"))

    out_cls = jax.block_until_ready(cls_fn(tokens, outputs))
    out_avg = jax.block_until_ready(avg_fn(tokens, outputs))

    # Pure-JAX references (exact PyTorch semantics)
    ref_cls = outputs[:, 0, 0]
    ref_avg = jnp.mean(jnp.mean(outputs, axis=1), axis=1)

    assert out_cls.shape == (B, D) and out_avg.shape == (B, D)
    assert jnp.allclose(out_cls, ref_cls, atol=1e-6, rtol=1e-6)
    assert jnp.allclose(out_avg, ref_avg, atol=1e-5, rtol=1e-5)

    # Also exercise the B == 1 pseudo-batch-split path of the avg kernel.
    out_avg1 = jax.block_until_ready(avg_fn(tokens[:1], outputs[:1]))
    ref_avg1 = jnp.mean(jnp.mean(outputs[:1], axis=1), axis=1)
    assert out_avg1.shape == (1, D)
    assert jnp.allclose(out_avg1, ref_avg1, atol=1e-5, rtol=1e-5)

    print("KERNEL_OK")
</pallas_src>

<mosaic_0001>
module attributes {stable_mosaic.version = 11 : i64} {
  func.func @_cls_kernel(%arg0: i32, %arg1: memref<1x1x8x32xf32, #tpu.memory_space<vmem>>, %arg2: memref<1x1x32xf32, #tpu.memory_space<vmem>>) attributes {dimension_semantics = [#tpu.dimension_semantics<parallel>], iteration_bounds = array<i64: 2>, scalar_prefetch = 0 : i64, scratch_operands = 0 : i64, tpu.core_type = #tpu.core_type<tc>, window_params = [{transform_indices = @transform_0, window_bounds = array<i64: 1, 1, 8, 32>}, {transform_indices = @transform_1, window_bounds = array<i64: 1, 1, 32>}]} {
    %c0 = arith.constant 0 : index
    %c0_0 = arith.constant 0 : index
    %c0_1 = arith.constant 0 : index
    %c0_2 = arith.constant 0 : index
    %0 = vector.load %arg1[%c0, %c0_0, %c0_1, %c0_2] : memref<1x1x8x32xf32, #tpu.memory_space<vmem>>, vector<1x1x1x32xf32>
    %1 = vector.shape_cast %0 : vector<1x1x1x32xf32> to vector<1x1x32xf32>
    %c0_3 = arith.constant 0 : index
    %c0_4 = arith.constant 0 : index
    %c0_5 = arith.constant 0 : index
    %2 = vector.load %arg2[%c0_3, %c0_4, %c0_5] : memref<1x1x32xf32, #tpu.memory_space<vmem>>, vector<1x1x32xf32>
    tpu.vector_store %arg2[%c0_3, %c0_4, %c0_5], %1 {strides = array<i32>} : memref<1x1x32xf32, #tpu.memory_space<vmem>>, vector<1x1x32xf32>,
    return
  }
  func.func @transform_0(%arg0: i32) -> (i32, i32, i32, i32) {
    %c0_i32 = arith.constant 0 : i32
    %c0_i32_0 = arith.constant 0 : i32
    %c0_i32_1 = arith.constant 0 : i32
    %c0_i32_2 = arith.constant 0 : i32
    return %arg0, %c0_i32, %c0_i32_0, %c0_i32_1 : i32, i32, i32, i32
  }
  func.func @transform_1(%arg0: i32) -> (i32, i32, i32) {
    %c0_i32 = arith.constant 0 : i32
    %c0_i32_0 = arith.constant 0 : i32
    %c0_i32_1 = arith.constant 0 : i32
    return %arg0, %c0_i32, %c0_i32_0 : i32, i32, i32
  }
}

</mosaic_0001>

<bundles_post_ra>
// kernel: pooler_forward.1
= control target key start
LH: loop header
LB: loop body
LE: loop exit
PB: predicated region body
PF: predicated region fallthrough
CT: control target
= control target key end

     0   :  { %6 = vsyncpa [#allocation3], 0  ;;  %s544_s0 = inlined_call_operand.hbm [shape: f32[2,8,8,32], index: 0, kind: input, shape index: {}]   ;;  %s545_s1 = inlined_call_operand.hbm [shape: f32[2,1,32], index: 1, kind: output, shape index: {}]  }
   0x1   :  { %8 = vsyncpa [#allocation3 + $0x1], 0 }
   0x2   :  { %9 = vsyncpa [#allocation4], 0 }
   0x3   :  { %11 = vsyncpa [#allocation4 + $0x1], 0  ;;  %s382_s6 = smov 0   ;;  %s384_s7 = smov 0  }
   0x4   :  { %s386_s8 = smov 0   ;;  %s388_s9 = smov 0  }
   0x5 LB: > { %s403_s10 = sadd.s32 4294967295, %s368_s9   ;;  %s214_s11 = sadd.s32 4294967294, %s368_s9   ;;  %s368_s9 = sphi %s388_s9, %s560_s9   ;;  %s364_s8 = sphi %s386_s8, %s559_s8   ;;  %s360_s7 = sphi %s384_s7, %s558_s7   ;;  %s356_s6 = sphi %s382_s6, %s557_s6  }
   0x6   : > { %s407_s12 = sadd.s32 1, %s368_s9   ;;  %s24_s13 = sadd.s32 1, %s364_s8 }
   0x7   : > { %s21_s14 = ssub.s32 %s368_s9, %s407_s12  ;;  %p31_p0 = scmp.ne.s32.totalorder %s364_s8, %s360_s7 }
   0x8   : > { %p22_p1 = scmp.eq.s32.totalorder %s21_s14, 0  ;;  %p32_p2 = scmp.eq.s32.totalorder %s368_s9, 0 }
   0x9   : > { %p37_p3 = scmp.ne.s32.totalorder %s360_s7, %s356_s6  ;;  %p38_p4 = scmp.eq.s32.totalorder %s403_s10, 0 }
   0xa   : > { %s419_s15 = scalar_select %p22_p1, %s364_s8, %s24_s13  }
   0xb   : > { %p421_p5 = por %p32_p2, %p31_p0  ;;  %p425_p6 = por %p38_p4, %p37_p3 }
   0xc   : > { %p61_p7 = scmp.eq.s32.totalorder %s403_s10, 1  ;;  %p67_p8 = scmp.eq.s32.totalorder %s214_s11, 1 }
   0xd   : > { %p238_p10 = scmp.lt.s32.totalorder %s368_s9, 2  ;;  %s87_s20 = sand.u32 1, %s364_s8  }
   0xe   : > { %p432_p11 = por %p61_p7, %p31_p0  ;;  %p436_p12 = por %p67_p8, %p37_p3 }
   0xf   : > { %s225_s21 = sshll.u32 %s368_s9, 10  ;;  %s217_s22 = sshll.u32 %s87_s20, 3 }
  0x10   : > { %s549_s18 = scalar_select %p432_p11, 1, 0 }
  0x11   : > { %s550_s19 = scalar_select %p436_p12, 1, 0 }
  0x12   : > { %s445_s25 = scalar_lea.hbm %s544_s0, %s225_s21  ;;  %s91_s26 = scalar_lea.vmem [#allocation2], %s217_s22 }
  0x13   : > { %s99_s27 = sshll.u32 %s91_s26, 4  ;;  %p449_p13 = pnand %p238_p10, %p421_p5  ;;  %s453_s27 = int_to_ptr.vmem [resolvable:$true] %s99_s27 }
  0x14   : > { %s88_s29 = scalar_lea.sflag [#allocation3], %s87_s20  ;;  %s272_s30 = scalar_lea.hbm %s445_s25, 128 }
  0x15   : > { %p273_p2 = scmp.ne.s32.totalorder %s445_s25, %s272_s30  ;;  %p274_p3 = pneg %p449_p13 }
  0x16   : > { %s277_s4 = scalar_lea.hbm %s544_s0, 2048  ;;  %p278_p5 = scmp.lt.u32.totalorder %s445_s25, %s544_s0 }
  0x17   : > { %p275_p4 = pnand %p274_p3, %p273_p2  ;;  %p279_p8 = scmp.lt.u32.totalorder %s277_s4, %s272_s30 }
  0x18   : > { %p281_p9 = scmp.lt.u32.totalorder %s272_s30, %s445_s25 }
  0x19   : > { %p276_p7 = pneg %p275_p4  ;;  %p280_p10 = por %p279_p8, %p278_p5 }
  0x1b   : > { %p282_p0 = por %p281_p9, %p280_p10 }
  0x1d   : > { %p283_p1 = pnand %p282_p0, %p276_p7 }
  0x1f   : > { %286 = shalt.err (!%p283_p1)
}
  0x20   : > { %s287_s13 = scalar_lea.vmem %s453_s27, 128  ;;  %s370_s14 = smov [#allocation2]  }
  0x21   : > { %p288_p2 = scmp.ne.s32.totalorder %s453_s27, %s287_s13  ;;  %s292_s16 = sshll.u32 %s370_s14, 4  ;;  %s293_s16 = int_to_ptr.vmem [resolvable:$false] %s292_s16 }
  0x22   : > { %s294_s20 = scalar_lea.vmem %s293_s16, 256  ;;  %p295_p11 = scmp.lt.s32.totalorder %s453_s27, %s293_s16 }
  0x23   : > { %p290_p4 = pnand %p288_p2, %p274_p3  ;;  %p296_p5 = scmp.lt.s32.totalorder %s294_s20, %s287_s13 }
  0x25   : > { %p291_p12 = pneg %p290_p4  ;;  %p297_p8 = por %p296_p5, %p295_p11 }
  0x27   : > { %p298_p9 = pnand %p297_p8, %p291_p12 }
  0x29   : > { %301 = shalt.err (!%p298_p9)
}
  0x2a   : > { %233 = dma.hbm_to_vmem [thread:$0]  (!%p449_p13), %s445_s25, 128, %s453_s27, %s88_s29  }
  0x2b   : > { %p552_p0 = scmp.lt.s32.totalorder %s368_s9, 3  ;;  %p553_p1 = scmp.ge.s32.totalorder %s368_s9, 1 }
  0x2d   : > { %p105_p3 = pnand %p553_p1, %p552_p0 }
  0x2e   : > { %s487_s21 = sand.u32 (!%p105_p3), 1, %s360_s7  }
  0x2f   : > { %108 = sbr.rel (%p105_p3) target bundleno = 81 (0x51), region = 24  ;;  %s221_s22 = sshll.u32 (!%p105_p3), %s487_s21, 3 }
  0x30   : > { %s111_s23 = scalar_lea.sflag (!%p105_p3), [#allocation3], %s487_s21  ;;  %s114_s24 = scalar_lea.vmem (!%p105_p3), [#allocation2], %s221_s22 }
  0x36   : > { %347 = dma.done.wait (%p425_p6), %s111_s23, 128  }
  0x37   : > { %349 = vsyncadd (%p425_p6), %s111_s23, 4294967168  ;;  %s131_s25 = scalar_lea.vmem [#allocation5], %s487_s21  ;;  %s222_s27 = sshll.u32 %s403_s10, 4  ;;  %vm133_vm0 = vcmask 253952   ;;  %v132_v0 = vld [vmem:[%s114_s24] sm:$0x1] }
  0x38   : > { %s148_s26 = sshll.u32 %s131_s25, 4  ;;  %s502_s30 = scalar_lea.hbm %s545_s1, %s222_s27  ;;  %134 = vst.msk [vmem:[%s131_s25] sm:$0x1] %vm133_vm0, %v132_v0  ;;  %s497_s26 = int_to_ptr.vmem [resolvable:$true] %s148_s26 }
  0x39   : > { %s136_s17 = scalar_lea.sflag [#allocation4], %s487_s21  ;;  %s302_s2 = scalar_lea.vmem %s497_s26, 16 }
  0x3a   : > { %p303_p6 = scmp.ne.s32.totalorder %s497_s26, %s302_s2  ;;  %p554_p11 = scmp.ne.s32.totalorder %s549_s18, 0 }
  0x3b   : > { %s371_s10 = smov [#allocation5]  }
  0x3c   : > { %p304_p12 = pnand %p303_p6, %p554_p11  ;;  %s306_s3 = sshll.u32 %s371_s10, 4  ;;  %s307_s3 = int_to_ptr.vmem [resolvable:$false] %s306_s3 }
  0x3d   : > { %s308_s4 = scalar_lea.vmem %s307_s3, 32  ;;  %p309_p7 = scmp.lt.s32.totalorder %s497_s26, %s307_s3 }
  0x3e   : > { %p305_p13 = pneg %p304_p12  ;;  %p310_p10 = scmp.lt.s32.totalorder %s308_s4, %s302_s2 }
  0x40   : > { %p311_p2 = por %p310_p10, %p309_p7 }
  0x42   : > { %p312_p4 = pnand %p311_p2, %p305_p13 }
  0x44   : > { %315 = shalt.err (!%p312_p4)
}
  0x45   : > { %s316_s5 = scalar_lea.hbm %s502_s30, 16  ;;  %s320_s14 = scalar_lea.hbm %s545_s1, 32 }
  0x46   : > { %p317_p5 = scmp.ne.s32.totalorder %s502_s30, %s316_s5  ;;  %p321_p0 = scmp.lt.u32.totalorder %s502_s30, %s545_s1 }
  0x47   : > { %p322_p1 = scmp.lt.u32.totalorder %s320_s14, %s316_s5  ;;  %p324_p6 = scmp.lt.u32.totalorder %s316_s5, %s502_s30 }
  0x48   : > { %p318_p8 = pnand %p317_p5, %p554_p11 }
  0x49   : > { %p323_p3 = por %p322_p1, %p321_p0 }
  0x4a   : > { %p319_p9 = pneg %p318_p8 }
  0x4b   : > { %p325_p12 = por %p324_p6, %p323_p3 }
  0x4d   : > { %p326_p13 = pnand %p325_p12, %p319_p9 }
  0x4f   : > { %329 = shalt.err (!%p326_p13)
}
  0x50   : > { %228 = dma.vmem_to_hbm [thread:$0]  (%p554_p11), %s497_s26, 16, %s502_s30, %s136_s17  }
  0x51 PF: > { %s160_s21 = sand.u32 1, %s356_s6   ;;  %p555_p7 = scmp.ne.s32.totalorder %s550_s19, 0 }
  0x52   : > { %p556_p10 = scmp.ge.s32.totalorder %s368_s9, 2  ;;  %s161_s22 = scalar_lea.sflag [#allocation4], %s160_s21 }
  0x54   : > { %p235_p2 = pnand %p556_p10, %p555_p7 }
  0x56   : > { %351 = dma.done.wait (!%p235_p2), %s161_s22, 16  }
  0x57   : > { %353 = vsyncadd (!%p235_p2), %s161_s22, 4294967280  ;;  %p14_p4 = scmp.ge.s32.totalorder %s407_s12, 4   ;;  %s557_s6 = smov %s360_s7 }
  0x58   : > { %s558_s7 = smov %s364_s8  ;;  %s559_s8 = smov %s419_s15 }
  0x59   : > { %s560_s9 = smov %s407_s12  ;;  %16 = sbr.rel (!%p14_p4) target bundleno = 5 (0x5), region = 69 }
  0x60   :  { %165 = vsyncpa [#allocation3], 1 }
  0x61   :  { %167 = vsyncpa [#allocation3 + $0x1], 1 }
  0x62   :  { %168 = vsyncpa [#allocation4], 1 }
  0x63   :  { %170 = vsyncpa [#allocation4 + $0x1], 1 }

</bundles_post_ra>
